<compile_context>
chip_gen: v7x
topology: tpu7x:2x2x1
jax: 0.10.0
libtpu: 0.0.40
codegen_flags: <defaults>
</compile_context>

<pallas_src>
import jax
import jax.numpy as jnp
from jax.experimental import pallas as pl
from jax.experimental.pallas import tpu as pltpu

_LANE = 128


def _decoder_kernel(rnn_ref, lat_ref, w1a_ref, w1b_ref, b1_ref,
                    w2_ref, b2_ref, o_ref):
    # rnn_ref: [B, R]      lat_ref: [B, L]
    # w1a_ref: [R, 128]    w1b_ref: [L, 128]   b1_ref: [1, 128]
    # w2_ref : [128, 128]  b2_ref : [1, 128]   o_ref : [B, 128]
    h = (jnp.dot(rnn_ref[...], w1a_ref[...], preferred_element_type=jnp.float32)
         + jnp.dot(lat_ref[...], w1b_ref[...], preferred_element_type=jnp.float32)
         + b1_ref[...])
    h = jnp.maximum(h, 0.0)                                   # ReLU (VPU)
    y = jnp.dot(h, w2_ref[...], preferred_element_type=jnp.float32) + b2_ref[...]
    o_ref[...] = jnp.tanh(y).astype(o_ref.dtype)              # tanh (EUP)


def keypoint_decoder(rnn_state, latent_code, w1, b1, w2, b2):
    """Pallas implementation of KeypointDecoder.forward.

    rnn_state : [B, R],  latent_code : [B, L]
    w1 : [R+L, 128], b1 : [1, 128], w2 : [128, K*3], b2 : [1, K*3]
    (weights are stored transposed relative to nn.Linear so the kernel
    computes x @ W directly).
    """
    B, R = rnn_state.shape
    L = latent_code.shape[1]
    d_hid = w1.shape[1]
    d_out = w2.shape[1]

    # Split W1 so the concat becomes a sum of two matmuls inside the kernel.
    # (Trace-time slicing; constant-folded under jit.)
    w1a = w1[:R, :]
    w1b = w1[R:, :]

    # Zero-pad the output projection to a lane-dense 128 columns so the
    # store is a full-lane vst (padded cols produce tanh(0) = 0, sliced off).
    d_out_pad = ((d_out + _LANE - 1) // _LANE) * _LANE
    pad = d_out_pad - d_out
    w2_pad = jnp.pad(w2, ((0, 0), (0, pad)))
    b2_pad = jnp.pad(b2, ((0, 0), (0, pad)))

    vmem = pl.BlockSpec(memory_space=pltpu.MemorySpace.VMEM)
    out_padded = pl.pallas_call(
        _decoder_kernel,
        out_shape=jax.ShapeDtypeStruct((B, d_out_pad), jnp.float32),
        in_specs=[vmem] * 7,
        out_specs=vmem,
    )(rnn_state, latent_code, w1a, w1b, b1, w2_pad, b2_pad)

    # TODO(synk): if this decoder is called per rollout timestep, stack the
    # timesteps into one [B*T, F] call with a row-tiled grid (weights resident
    # via constant index_map) instead of invoking this per step.
    return out_padded[:, :d_out]


def _reference(rnn_state, latent_code, w1, b1, w2, b2):
    x = jnp.concatenate([rnn_state, latent_code], axis=-1)
    h = jnp.maximum(x @ w1 + b1, 0.0)
    return jnp.tanh(h @ w2 + b2)


if __name__ == "__main__":
    # cfg: num_rnn_units=32, latent_code_size=16, num_keypoints=10
    num_rnn_units = 32
    latent_code_size = 16
    num_keypoints = 10
    batch = 8

    hidden_indim = num_rnn_units + latent_code_size       # 48
    d_hidden = 128
    d_out = num_keypoints * 3                              # 30

    key = jax.random.PRNGKey(0)
    k_rnn, k_lat, k_w1, k_b1, k_w2, k_b2 = jax.random.split(key, 6)

    rnn_state = jax.random.normal(k_rnn, (batch, num_rnn_units), jnp.float32)
    latent_code = jax.random.normal(k_lat, (batch, latent_code_size), jnp.float32)

    # Deterministic synthetic parameters (nn.Linear shapes, stored transposed
    # so the kernel computes x @ W directly).
    w1 = jax.random.normal(k_w1, (hidden_indim, d_hidden), jnp.float32) * 0.1
    b1 = jax.random.normal(k_b1, (1, d_hidden), jnp.float32) * 0.1
    w2 = jax.random.normal(k_w2, (d_hidden, d_out), jnp.float32) * 0.1
    b2 = jax.random.normal(k_b2, (1, d_out), jnp.float32) * 0.1

    out = keypoint_decoder(rnn_state, latent_code, w1, b1, w2, b2)
    out = jax.block_until_ready(out)

    ref = _reference(rnn_state, latent_code, w1, b1, w2, b2)
    assert out.shape == (batch, d_out), out.shape
    assert jnp.allclose(out, ref, atol=1e-5, rtol=1e-5), (
        float(jnp.max(jnp.abs(out - ref))))

    print("KERNEL_OK")
</pallas_src>

<mosaic_0001>
module attributes {stable_mosaic.version = 11 : i64} {
  func.func @_decoder_kernel(%arg0: memref<8x32xf32, #tpu.memory_space<vmem>>, %arg1: memref<8x16xf32, #tpu.memory_space<vmem>>, %arg2: memref<32x128xf32, #tpu.memory_space<vmem>>, %arg3: memref<16x128xf32, #tpu.memory_space<vmem>>, %arg4: memref<1x128xf32, #tpu.memory_space<vmem>>, %arg5: memref<128x128xf32, #tpu.memory_space<vmem>>, %arg6: memref<1x128xf32, #tpu.memory_space<vmem>>, %arg7: memref<8x128xf32, #tpu.memory_space<vmem>>) attributes {dimension_semantics = [], scalar_prefetch = 0 : i64, scratch_operands = 0 : i64, tpu.core_type = #tpu.core_type<tc>} {
    %c0 = arith.constant 0 : index
    %c0_0 = arith.constant 0 : index
    %0 = vector.load %arg0[%c0, %c0_0] : memref<8x32xf32, #tpu.memory_space<vmem>>, vector<8x32xf32>
    %c0_1 = arith.constant 0 : index
    %c0_2 = arith.constant 0 : index
    %1 = vector.load %arg2[%c0_1, %c0_2] : memref<32x128xf32, #tpu.memory_space<vmem>>, vector<32x128xf32>
    %cst = arith.constant dense<0.000000e+00> : vector<8x128xf32>
    %2 = tpu.matmul %0, %1, %cst {dimension_numbers = #tpu.dot_dimension_numbers<[1], [0], [0], [1], [0, 0, 1, 1], [], []>} : vector<8x32xf32>, vector<32x128xf32>, vector<8x128xf32> -> vector<8x128xf32>
    %c0_3 = arith.constant 0 : index
    %c0_4 = arith.constant 0 : index
    %3 = vector.load %arg1[%c0_3, %c0_4] : memref<8x16xf32, #tpu.memory_space<vmem>>, vector<8x16xf32>
    %c0_5 = arith.constant 0 : index
    %c0_6 = arith.constant 0 : index
    %4 = vector.load %arg3[%c0_5, %c0_6] : memref<16x128xf32, #tpu.memory_space<vmem>>, vector<16x128xf32>
    %cst_7 = arith.constant dense<0.000000e+00> : vector<8x128xf32>
    %5 = tpu.matmul %3, %4, %cst_7 {dimension_numbers = #tpu.dot_dimension_numbers<[1], [0], [0], [1], [0, 0, 1, 1], [], []>} : vector<8x16xf32>, vector<16x128xf32>, vector<8x128xf32> -> vector<8x128xf32>
    %6 = arith.addf %2, %5 : vector<8x128xf32>
    %c0_8 = arith.constant 0 : index
    %c0_9 = arith.constant 0 : index
    %7 = vector.load %arg4[%c0_8, %c0_9] : memref<1x128xf32, #tpu.memory_space<vmem>>, vector<1x128xf32>
    %8 = vector.broadcast %7 : vector<1x128xf32> to vector<8x128xf32>
    %9 = arith.addf %6, %8 : vector<8x128xf32>
    %cst_10 = arith.constant 0.000000e+00 : f32
    %10 = vector.broadcast %cst_10 : f32 to vector<8x128xf32>
    %11 = arith.maximumf %9, %10 : vector<8x128xf32>
    %c0_11 = arith.constant 0 : index
    %c0_12 = arith.constant 0 : index
    %12 = vector.load %arg5[%c0_11, %c0_12] : memref<128x128xf32, #tpu.memory_space<vmem>>, vector<128x128xf32>
    %cst_13 = arith.constant dense<0.000000e+00> : vector<8x128xf32>
    %13 = tpu.matmul %11, %12, %cst_13 {dimension_numbers = #tpu.dot_dimension_numbers<[1], [0], [0], [1], [0, 0, 1, 1], [], []>} : vector<8x128xf32>, vector<128x128xf32>, vector<8x128xf32> -> vector<8x128xf32>
    %c0_14 = arith.constant 0 : index
    %c0_15 = arith.constant 0 : index
    %14 = vector.load %arg6[%c0_14, %c0_15] : memref<1x128xf32, #tpu.memory_space<vmem>>, vector<1x128xf32>
    %15 = vector.broadcast %14 : vector<1x128xf32> to vector<8x128xf32>
    %16 = arith.addf %13, %15 : vector<8x128xf32>
    %17 = math.tanh %16 : vector<8x128xf32>
    %c0_16 = arith.constant 0 : index
    %c0_17 = arith.constant 0 : index
    %18 = vector.load %arg7[%c0_16, %c0_17] : memref<8x128xf32, #tpu.memory_space<vmem>>, vector<8x128xf32>
    tpu.vector_store %arg7[%c0_16, %c0_17], %17 {strides = array<i32>} : memref<8x128xf32, #tpu.memory_space<vmem>>, vector<8x128xf32>,
    return
  }
}

</mosaic_0001>

<bundles_post_ra>
// kernel: tpu_custom_call.1
= control target key start
LH: loop header
LB: loop body
LE: loop exit
PB: predicated region body
PF: predicated region fallthrough
CT: control target
= control target key end

     0   :  { %12 = vsyncpa [#allocation3], 0  ;;  %s777_s0 = inlined_call_operand.hbm [shape: f32[8,32], index: 0, kind: input, shape index: {}]   ;;  %s778_s1 = inlined_call_operand.hbm [shape: f32[8,16], index: 1, kind: input, shape index: {}]   ;;  %s779_s2 = inlined_call_operand.hbm [shape: f32[32,128], index: 2, kind: input, shape index: {}]   ;;  %s780_s3 = inlined_call_operand.hbm [shape: f32[16,128], index: 3, kind: input, shape index: {}]   ;;  %s781_s4 = inlined_call_operand.vmem [shape: f32[1,128], index: 4, kind: input, shape index: {}]   ;;  %s782_s5 = inlined_call_operand.hbm [shape: f32[128,128], index: 5, kind: input, shape index: {}]   ;;  %s783_s6 = inlined_call_operand.vmem [shape: f32[1,128], index: 6, kind: input, shape index: {}]   ;;  %s784_s7 = inlined_call_operand.hbm [shape: f32[8,128], index: 7, kind: output, shape index: {}]  }
   0x1   :  { %13 = vsyncpa [#allocation6], 0 }
   0x2   :  { %14 = vsyncpa [#allocation9], 0 }
   0x3   :  { %15 = vsyncpa [#allocation4], 0  ;;  %s636_s24 = smov [#allocation5]   ;;  %s496_s28 = scalar_lea.hbm %s778_s1, 128 }
   0x4   :  { %s32_s25 = sshll.u32 %s636_s24, 4  ;;  %p497_p0 = scmp.ne.s32.totalorder %s778_s1, %s496_s28  ;;  %s33_s25 = int_to_ptr.vmem [resolvable:$true] %s32_s25 }
   0x5   :  { %p500_p1 = scmp.lt.u32.totalorder %s496_s28, %s778_s1 }
   0x7   :  { %p502_p2 = pnand %p500_p1, %p497_p0 }
   0x9   :  { %505 = shalt.err (!%p502_p2)
}
   0xa   :  { %s506_s10 = scalar_lea.vmem %s33_s25, 128  ;;  %p511_p4 = scmp.lt.s32.totalorder %s33_s25, %s33_s25 }
   0xb   :  { %p507_p3 = scmp.ne.s32.totalorder %s33_s25, %s506_s10  ;;  %p512_p5 = scmp.lt.s32.totalorder %s506_s10, %s506_s10 }
   0xd   :  { %p513_p6 = por %p512_p5, %p511_p4 }
   0xf   :  { %p514_p7 = pnand %p513_p6, %p507_p3 }
  0x11   :  { %517 = shalt.err (!%p514_p7)
}
  0x12   :  { %35 = dma.hbm_to_vmem [thread:$0]  %s778_s1, 128, %s33_s25, [#allocation6]  }
  0x13   :  { %s637_s13 = smov [#allocation8]   ;;  %s638_s15 = smov [#allocation2]  }
  0x14   :  { %s53_s14 = sshll.u32 %s637_s13, 4  ;;  %s22_s16 = sshll.u32 %s638_s15, 4  ;;  %s54_s14 = int_to_ptr.vmem [resolvable:$true] %s53_s14  ;;  %s23_s16 = int_to_ptr.vmem [resolvable:$true] %s22_s16 }
  0x15   :  { %s518_s19 = scalar_lea.hbm %s780_s3, 256 }
  0x16   :  { %p519_p8 = scmp.ne.s32.totalorder %s780_s3, %s518_s19  ;;  %p522_p9 = scmp.lt.u32.totalorder %s518_s19, %s780_s3 }
  0x18   :  { %p524_p10 = pnand %p522_p9, %p519_p8 }
  0x1a   :  { %527 = shalt.err (!%p524_p10)
}
  0x1b   :  { %s528_s1 = scalar_lea.vmem %s54_s14, 256  ;;  %p533_p12 = scmp.lt.s32.totalorder %s54_s14, %s54_s14 }
  0x1c   :  { %p529_p11 = scmp.ne.s32.totalorder %s54_s14, %s528_s1  ;;  %p534_p13 = scmp.lt.s32.totalorder %s528_s1, %s528_s1 }
  0x1e   :  { %p535_p0 = por %p534_p13, %p533_p12 }
  0x20   :  { %p536_p1 = pnand %p535_p0, %p529_p11 }
  0x22   :  { %539 = shalt.err (!%p536_p1)
}
  0x23   :  { %s639_s24 = smov 128   ;;  %s640_s25 = smov 8  }
  0x24   :  { %59 = dma.hbm_to_vmem [thread:$0]  %s780_s3, 256, %s54_s14, [#allocation9], %s639_s24, %s639_s24, %s640_s25  }
  0x25   :  { %s540_s30 = scalar_lea.hbm %s777_s0, 128 }
  0x26   :  { %p541_p2 = scmp.ne.s32.totalorder %s777_s0, %s540_s30  ;;  %p544_p3 = scmp.lt.u32.totalorder %s540_s30, %s777_s0 }
  0x28   :  { %p546_p4 = pnand %p544_p3, %p541_p2 }
  0x2a   :  { %549 = shalt.err (!%p546_p4)
}
  0x2b   :  { %s550_s12 = scalar_lea.vmem %s23_s16, 128  ;;  %p555_p6 = scmp.lt.s32.totalorder %s23_s16, %s23_s16 }
  0x2c   :  { %p551_p5 = scmp.ne.s32.totalorder %s23_s16, %s550_s12  ;;  %p556_p7 = scmp.lt.s32.totalorder %s550_s12, %s550_s12 }
  0x2e   :  { %p557_p8 = por %p556_p7, %p555_p6 }
  0x30   :  { %p558_p9 = pnand %p557_p8, %p551_p5 }
  0x32   :  { %561 = shalt.err (!%p558_p9)
}
  0x33   :  { %25 = dma.hbm_to_vmem [thread:$0]  %s777_s0, 128, %s23_s16, [#allocation3]  }
  0x34   :  { %s641_s14 = smov [#allocation7]   ;;  %s642_s17 = smov [#allocation10]  }
  0x35   :  { %s41_s15 = sshll.u32 %s641_s14, 4  ;;  %s67_s18 = sshll.u32 %s642_s17, 4  ;;  %s42_s15 = int_to_ptr.vmem [resolvable:$true] %s41_s15  ;;  %s68_s18 = int_to_ptr.vmem [resolvable:$true] %s67_s18 }
  0x36   :  { %s562_s21 = scalar_lea.hbm %s779_s2, 512 }
  0x37   :  { %p563_p10 = scmp.ne.s32.totalorder %s779_s2, %s562_s21  ;;  %p566_p11 = scmp.lt.u32.totalorder %s562_s21, %s779_s2 }
  0x39   :  { %p568_p12 = pnand %p566_p11, %p563_p10 }
  0x3b   :  { %571 = shalt.err (!%p568_p12)
}
  0x3c   :  { %s572_s0 = scalar_lea.vmem %s42_s15, 512  ;;  %p577_p0 = scmp.lt.s32.totalorder %s42_s15, %s42_s15 }
  0x3d   :  { %p573_p13 = scmp.ne.s32.totalorder %s42_s15, %s572_s0  ;;  %p578_p1 = scmp.lt.s32.totalorder %s572_s0, %s572_s0 }
  0x3f   :  { %p579_p2 = por %p578_p1, %p577_p0 }
  0x41   :  { %p580_p3 = pnand %p579_p2, %p573_p13 }
  0x43   :  { %583 = shalt.err (!%p580_p3)
}
  0x44   :  { %47 = dma.hbm_to_vmem [thread:$0]  %s779_s2, 512, %s42_s15, [#allocation6], %s639_s24, %s639_s24, %s640_s25  }
  0x45   :  { %s584_s30 = scalar_lea.hbm %s782_s5, 2048 }
  0x46   :  { %p585_p4 = scmp.ne.s32.totalorder %s782_s5, %s584_s30  ;;  %p588_p5 = scmp.lt.u32.totalorder %s584_s30, %s782_s5 }
  0x48   :  { %p590_p6 = pnand %p588_p5, %p585_p4 }
  0x4a   :  { %593 = shalt.err (!%p590_p6)
}
  0x4b   :  { %s594_s12 = scalar_lea.vmem %s68_s18, 2048  ;;  %p599_p8 = scmp.lt.s32.totalorder %s68_s18, %s68_s18 }
  0x4c   :  { %p595_p7 = scmp.ne.s32.totalorder %s68_s18, %s594_s12  ;;  %p600_p9 = scmp.lt.s32.totalorder %s594_s12, %s594_s12 }
  0x4e   :  { %p601_p10 = por %p600_p9, %p599_p8 }
  0x50   :  { %p602_p11 = pnand %p601_p10, %p595_p7 }
  0x52   :  { %605 = shalt.err (!%p602_p11)
}
  0x53   :  { %73 = dma.hbm_to_vmem [thread:$0]  %s782_s5, 2048, %s68_s18, [#allocation9], %s639_s24, %s639_s24, %s640_s25  }
  0x54   :  { %628 = dma.done.wait [#allocation3], 128  }
  0x55   :  { %629 = vsyncadd [#allocation3], 4294967168 }
  0x56   :  { %630 = dma.done.wait [#allocation6], 640  }
  0x57   :  { %631 = vsyncadd [#allocation6], 4294966656 }
  0x58   :  { %632 = dma.done.wait [#allocation9], 2304  }
  0x59   :  { %633 = vsyncadd [#allocation9], 4294964992  ;;  %v643_v0 = vmov 0.0|0.0   ;;  %vm644_vm0 = vmmov 0   ;;  %v645_v1 = vmov 0.0   ;;  %v97_v2 = vld [vmem:[#allocation8] sm:$0xff] }
  0x5a   :  { %450 = vmatprep.subr.bf16.mxu1 %v643_v0  ;;  %401 = vmatprep.mubr.msk.f32.mxu1 %vm644_vm0, %v645_v1  ;;  %v98_v3 = vld [vmem:[#allocation8 + $0x8] sm:$0xff]  ;;  %v92_v5 = vld [vmem:[#allocation7] sm:$0xff]  ;;  %v96_v7 = vld [vmem:[#allocation5] sm:$0xff]  ;;  %vm99_vm1 = vcmask 130048   ;;  %vm173_vm2 = vcmask 261120   ;;  %s646_s14 = smov [#allocation11]  }
  0x5b   :  { %459 = vmatprep.subr.bf16.mxu0 %v643_v0  ;;  %447 = vmatprep.mubr.msk.f32.mxu0 %vm644_vm0, %v645_v1  ;;  %v451_v4 = vpack.c.bf16 %v98_v3, %v97_v2  ;;  %v93_v6 = vld [vmem:[#allocation7 + $0x8] sm:$0xff]  ;;  %v256_v8 = vld [vmem:[#allocation10] sm:$0xff]  ;;  %v257_v10 = vld [vmem:[#allocation10 + $0x8] sm:$0xff]  ;;  %s357_s15 = sshll.u32 %s646_s14, 4  ;;  %s358_s15 = int_to_ptr.vmem [resolvable:$true] %s357_s15 }
  0x5c   :  { %v454_v9 = vpack.c.bf16 %v93_v6, %v92_v5  ;;  %v258_v11 = vld [vmem:[#allocation10 + $0x10] sm:$0xff]  ;;  %v259_v12 = vld [vmem:[#allocation10 + $0x18] sm:$0xff]  ;;  %v94_v13 = vld [vmem:[#allocation7 + $0x10] sm:$0xff]  ;;  %v460_v15 = vpack.c.bf16 %v257_v10, %v256_v8  ;;  %s606_s17 = scalar_lea.vmem %s358_s15, 128  ;;  %p611_p13 = scmp.lt.s32.totalorder %s358_s15, %s358_s15 }
  0x5d   :  { %452 = vmatpush3.bf16.msra.mxu1 %v451_v4  ;;  %v95_v14 = vld [vmem:[#allocation7 + $0x18] sm:$0xff]  ;;  %v463_v16 = vpack.c.bf16 %v259_v12, %v258_v11  ;;  %v260_v18 = vld [vmem:[#allocation10 + $0x20] sm:$0xff]  ;;  %v262_v22 = vld [vmem:[#allocation10 + $0x30] sm:$0xff]  ;;  %p607_p12 = scmp.ne.s32.totalorder %s358_s15, %s606_s17  ;;  %p612_p0 = scmp.lt.s32.totalorder %s606_s17, %s606_s17 }
  0x5e   :  { %453 = vmatprep.subr.bf16.mxu1 %v643_v0  ;;  %461 = vmatpush3.bf16.msra.mxu0 %v460_v15  ;;  %v457_v17 = vpack.c.bf16 %v95_v14, %v94_v13  ;;  %v261_v19 = vld [vmem:[#allocation10 + $0x28] sm:$0xff]  ;;  %v91_v21 = vld [vmem:[#allocation2] sm:$0xff]  ;;  %v263_v23 = vld [vmem:[#allocation10 + $0x38] sm:$0xff] }
  0x5f   :  { %462 = vmatprep.subr.bf16.mxu0 %v643_v0  ;;  %v466_v20 = vpack.c.bf16 %v261_v19, %v260_v18  ;;  %v469_v24 = vpack.c.bf16 %v263_v23, %v262_v22  ;;  %v264_v25 = vld [vmem:[#allocation10 + $0x40] sm:$0xff]  ;;  %v265_v26 = vld [vmem:[#allocation10 + $0x48] sm:$0xff]  ;;  %v266_v28 = vld [vmem:[#allocation10 + $0x50] sm:$0xff]  ;;  %p613_p1 = por %p612_p0, %p611_p13 }
  0x60   :  { %402 = vmatmul.mubr.msk.f32.vlgmr.msra.gmra.mrb[0].mxu1 %vm99_vm1, %v96_v7  ;;  %v472_v27 = vpack.c.bf16 %v265_v26, %v264_v25  ;;  %v267_v29 = vld [vmem:[#allocation10 + $0x58] sm:$0xff]  ;;  %v268_v31 = vld [vmem:[#allocation10 + $0x60] sm:$0xff]  ;;  %v269_v32 = vld [vmem:[#allocation10 + $0x68] sm:$0xff] }
  0x61   :  { %455 = vmatpush3.bf16.msra.mxu1 %v454_v9  ;;  %412 = vmatprep.mubr.msk.f32.mxu1 %vm644_vm0, %v645_v1  ;;  %v475_v30 = vpack.c.bf16 %v267_v29, %v266_v28  ;;  %v478_v33 = vpack.c.bf16 %v269_v32, %v268_v31  ;;  %v270_v34 = vld [vmem:[#allocation10 + $0x70] sm:$0xff]  ;;  %v271_v35 = vld [vmem:[#allocation10 + $0x78] sm:$0xff]  ;;  %v370_v40 = vld [vmem:[%s781_s4] ss:$0 sm:$0xff]  ;;  %p614_p2 = pnand %p613_p1, %p607_p12 }
  0x62   :  { %456 = vmatprep.subr.bf16.mxu1 %v643_v0  ;;  %464 = vmatpush3.bf16.msra.mxu0 %v463_v16  ;;  %v481_v36 = vpack.c.bf16 %v271_v35, %v270_v34  ;;  %v371_v45 = vld [vmem:[%s783_s6] ss:$0 sm:$0xff] }
  0x63   :  { %465 = vmatprep.subr.bf16.mxu0 %v643_v0 }
  0x65   :  { %458 = vmatpush3.bf16.msra.mxu1 %v457_v17 }
  0x66   :  { %467 = vmatpush3.bf16.msra.mxu0 %v466_v20 }
  0x67   :  { %468 = vmatprep.subr.bf16.mxu0 %v643_v0 }
  0x68   :  { %413 = vmatmul.mubr.msk.f32.vlgmr.msra.gmra.mrb[2].mxu1 %vm173_vm2, %v91_v21 }
  0x6a   :  { %470 = vmatpush3.bf16.msra.mxu0 %v469_v24 }
  0x6b   :  { %471 = vmatprep.subr.bf16.mxu0 %v643_v0 }
  0x6e   :  { %473 = vmatpush3.bf16.msra.mxu0 %v472_v27 }
  0x6f   :  { %474 = vmatprep.subr.bf16.mxu0 %v643_v0 }
  0x72   :  { %476 = vmatpush3.bf16.msra.mxu0 %v475_v30 }
  0x73   :  { %477 = vmatprep.subr.bf16.mxu0 %v643_v0 }
  0x76   :  { %479 = vmatpush3.bf16.msra.mxu0 %v478_v33 }
  0x77   :  { %480 = vmatprep.subr.bf16.mxu0 %v643_v0 }
  0x7a   :  { %482 = vmatpush3.bf16.msra.mxu0 %v481_v36 }
 0x133   :  { %v169_v37 = vpop.f32.mrb[0].mxu1 }
 0x134   :  { %v403_v38 = vpop.f32.mrb[1].mxu1 }
 0x13b   :  { %v243_v39 = vpop.f32.mrb[2].mxu1 }
 0x13c   :  { %v244_v41 = vadd.f32 %v243_v39, %v169_v37  ;;  %v414_v42 = vpop.f32.mrb[3].mxu1 }
 0x13e   :  { %v254_v43 = vadd.f32 %v370_v40, %v244_v41 }
 0x140   :  { %v255_v44 = vmax.f32 %v254_v43, 0.0 }
 0x142   :  { %448 = vmatmul.mubr.f32.vlgmr.msra.gmra.mrb[0].mxu0 %v255_v44 }
 0x215   :  { %v345_v46 = vpop.f32.mrb[0].mxu0 }
 0x216   :  { %v346_v47 = vadd.f32 %v371_v45, %v345_v46  ;;  %v449_v48 = vpop.f32.mrb[1].mxu0 }
 0x218   :  { %494 = vtanh.f32 %v346_v47 }
 0x222   :  { %v495_v49 = vpop.eup %494 }
 0x223   :  { %350 = vst [vmem:[#allocation11] sm:$0xff] %v495_v49 }
 0x224   :  { %617 = shalt.err (!%p614_p2)
}
 0x225   :  { %s618_s6 = scalar_lea.hbm %s784_s7, 128 }
 0x226   :  { %p619_p3 = scmp.ne.s32.totalorder %s784_s7, %s618_s6  ;;  %p622_p4 = scmp.lt.u32.totalorder %s618_s6, %s784_s7 }
 0x228   :  { %p624_p5 = pnand %p622_p4, %p619_p3 }
 0x22a   :  { %627 = shalt.err (!%p624_p5)
}
 0x22b   :  { %360 = dma.vmem_to_hbm [thread:$0]  %s358_s15, 128, %s784_s7, [#allocation4]  }
 0x22c   :  { %634 = dma.done.wait [#allocation4], 128  }
 0x22d   :  { %635 = vsyncadd [#allocation4], 4294967168 }
 0x22e   :  { %364 = vsyncpa [#allocation3], 1 }
 0x22f   :  { %365 = vsyncpa [#allocation6], 1 }
 0x230   :  { %366 = vsyncpa [#allocation9], 1 }
 0x231   :  { %367 = vsyncpa [#allocation4], 1 }

</bundles_post_ra>
